<compile_context>
chip_gen: v5e
topology: v5e:2x2
jax: 0.10.0
libtpu: 0.0.40
codegen_flags: <defaults>
</compile_context>

<pallas_src>
import jax
import jax.numpy as jnp
from jax import lax
from jax.experimental import pallas as pl
from jax.experimental.pallas import tpu as pltpu

IMAGE_SIZE = 4            # MainModel(image_size=4) -> 4x4 PCT kernel, padding='same'
_DEFAULT_TILE_N = 8192    # lane-dense column tile (multiple of 128)


# ----------------------------------------------------------------------------
# Fused Pallas kernel: SubNet -> PCT kernel generation -> depthwise conv
# ----------------------------------------------------------------------------
def fused_pct_kernel(x_ref, w1t_ref, b1_ref, w2t_ref, b2_ref, cols_ref, o_ref):
    S = IMAGE_SIZE

    # ---- SubNet: relu(fc1) -> fc2 -> sigmoid*3 + 1 (all on-chip) ----
    x = x_ref[...]                                                     # (1, 32)
    h = jnp.dot(x, w1t_ref[...], preferred_element_type=jnp.float32) + b1_ref[...]
    h = jnp.maximum(h, 0.0)
    y = jnp.dot(h, w2t_ref[...], preferred_element_type=jnp.float32) + b2_ref[...]
    nl = jax.nn.sigmoid(y) * 3.0 + 1.0                                 # (1,4)=[n1,l1,n2,l2]

    # Pick n1 (col 0) and n2 (col 2) into a (2,1) without scalar extraction:
    ri = lax.broadcasted_iota(jnp.int32, (2, 4), 0)
    ci = lax.broadcasted_iota(jnp.int32, (2, 4), 1)
    sel = jnp.where(ci == 2 * ri, 1.0, 0.0)                            # row p picks col 2p
    n12 = jnp.sum(nl * sel, axis=1, keepdims=True)                     # (2,1): [n1; n2]
    # l1/l2 (phase) never reach the magnitude output: |mask*exp(-1j*l*Theta)| == mask.

    # ---- static PCT geometry generated on-chip (16 values, trivially cheap) ----
    ti = lax.broadcasted_iota(jnp.int32, (1, S * S), 1).astype(jnp.float32)
    kif = jnp.floor(ti * (1.0 / S))                                    # ki
    kjf = ti - S * kif                                                 # kj
    c = (1.0 + S) / 2.0
    xn = (kif + 1.0 - c) / (c - 1.0)
    yn = (kjf + 1.0 - c) / (c - 1.0)
    r2 = xn * xn + yn * yn                                             # (1, S*S), row-major
    mask = jnp.where(r2 <= 1.0, 1.0, 0.0)                              # disk mask (R <= 1)

    # ---- both PCT magnitude kernels in one (2, S*S) LHS ----
    ker = jnp.abs(mask * jnp.cos(jnp.pi * n12 * r2)) * mask            # (2, S*S)

    # ---- depthwise 'same' conv: single MXU matmul, single unmasked store ----
    o_ref[...] = jnp.dot(ker, cols_ref[...], preferred_element_type=jnp.float32)


# ----------------------------------------------------------------------------
# Wrapper
# ----------------------------------------------------------------------------
def main_model_forward(input_data, image, params, *, tile_n=_DEFAULT_TILE_N):
    """input_data: (1, 32); image: (N, C, H, W). Returns (2N, C, H, W)."""
    N, C, H, W = image.shape
    S = IMAGE_SIZE
    P = N * C * H * W

    # PyTorch padding='same' for an even kernel (k=4): pad (1, 2) per spatial dim.
    lo = (S - 1) // 2
    hi = (S - 1) - lo
    patches = lax.conv_general_dilated_patches(
        image.astype(jnp.float32), filter_shape=(S, S), window_strides=(1, 1),
        padding=((lo, hi), (lo, hi)),
        dimension_numbers=("NCHW", "OIHW", "NCHW"))
    # (N, C*S*S, H, W); patch-channel index = c*S*S + (ki*S + kj)
    cols = patches.reshape(N, C, S * S, H, W)
    cols = jnp.transpose(cols, (2, 0, 1, 3, 4)).reshape(S * S, P)      # lane-dense (16, P)

    # Tile the column axis: TN multiple of 128; zero-pad columns if needed.
    P128 = ((P + 127) // 128) * 128
    TN = min(tile_n, P128)
    P_pad = pl.cdiv(P, TN) * TN
    if P_pad != P:
        cols = jnp.pad(cols, ((0, 0), (0, P_pad - P)))

    resident = lambda shape: pl.BlockSpec(shape, lambda j: (0, 0))

    out = pl.pallas_call(
        fused_pct_kernel,
        out_shape=jax.ShapeDtypeStruct((2, P_pad), jnp.float32),
        grid=(P_pad // TN,),
        in_specs=[
            resident((1, 32)),                                   # x
            resident((32, 16)),                                  # w1^T
            resident((1, 16)),                                   # b1
            resident((16, 4)),                                   # w2^T
            resident((1, 4)),                                    # b2
            pl.BlockSpec((S * S, TN), lambda j: (0, j)),         # im2col patches
        ],
        out_specs=pl.BlockSpec((2, TN), lambda j: (0, j)),
        compiler_params=pltpu.CompilerParams(
            dimension_semantics=("parallel",),
            vmem_limit_bytes=32 * 1024 * 1024),
    )(input_data.astype(jnp.float32),
      params["w1"].T.astype(jnp.float32),
      params["b1"].reshape(1, -1).astype(jnp.float32),
      params["w2"].T.astype(jnp.float32),
      params["b2"].reshape(1, -1).astype(jnp.float32),
      cols)

    resp = out[:, :P].reshape(2, N, C, H, W)
    # MainModel returns the list [resp1, resp2]; PCT.forward torch.cat's it.
    return jnp.concatenate([resp[0], resp[1]], axis=0)                 # (2N, C, H, W)


# ----------------------------------------------------------------------------
# pure-JAX reference (correctness sanity check for the Pallas kernel)
# ----------------------------------------------------------------------------
def reference_forward(input_data, image, params):
    h = jnp.maximum(input_data @ params["w1"].T + params["b1"], 0.0)
    nl = jax.nn.sigmoid(h @ params["w2"].T + params["b2"]) * 3.0 + 1.0
    S = IMAGE_SIZE
    x = jnp.linspace(1.0, S, S)
    X, Y = jnp.meshgrid(x, x, indexing="ij")
    c = (1.0 + S) / 2.0
    Xn = (X - c) / (c - 1.0)
    Yn = (Y - c) / (c - 1.0)
    R = jnp.sqrt(Xn ** 2 + Yn ** 2)
    Theta = jnp.arctan2(Yn, Xn)
    mask = (R <= 1.0).astype(jnp.float32)
    N, C, H, W = image.shape
    outs = []
    for (ni, li) in ((nl[0, 0], nl[0, 1]), (nl[0, 2], nl[0, 3])):
        amp = mask * jnp.cos(jnp.pi * ni * R ** 2)
        phase = mask * jnp.exp(-1j * li * Theta)
        mag = jnp.abs(amp * phase).astype(jnp.float32)
        ker = jnp.broadcast_to(mag, (C, 1, S, S))
        out = lax.conv_general_dilated(
            image, ker, window_strides=(1, 1), padding=((1, 2), (1, 2)),
            dimension_numbers=("NCHW", "OIHW", "NCHW"), feature_group_count=C)
        outs.append(out)
    return jnp.concatenate(outs, axis=0)


if __name__ == "__main__":
    key = jax.random.PRNGKey(0)
    k_x, k_img, k_w1, k_b1, k_w2, k_b2 = jax.random.split(key, 6)

    # SubNet input: cat(up[16], down[16]) -> (1, 32); image planes: (N=2, C=3, 16, 16)
    input_data = jax.random.normal(k_x, (1, 32), dtype=jnp.float32)
    image = jax.random.normal(k_img, (2, 3, 16, 16), dtype=jnp.float32)

    params = {
        "w1": jax.random.normal(k_w1, (16, 32), dtype=jnp.float32) * 0.1,
        "b1": jax.random.normal(k_b1, (16,), dtype=jnp.float32) * 0.1,
        "w2": jax.random.normal(k_w2, (4, 16), dtype=jnp.float32) * 0.1,
        "b2": jax.random.normal(k_b2, (4,), dtype=jnp.float32) * 0.1,
    }

    fwd = jax.jit(main_model_forward)
    out = jax.block_until_ready(fwd(input_data, image, params))

    ref = jax.block_until_ready(reference_forward(input_data, image, params))
    assert out.shape == (4, 3, 16, 16), out.shape
    max_err = float(jnp.max(jnp.abs(out - ref)))
    assert jnp.allclose(out, ref, atol=2e-3, rtol=2e-3), max_err

    print("KERNEL_OK")
</pallas_src>

<mosaic_0001>
module attributes {stable_mosaic.version = 11 : i64} {
  func.func @fused_pct_kernel(%arg0: i32, %arg1: memref<1x32xf32, #tpu.memory_space<vmem>>, %arg2: memref<32x16xf32, #tpu.memory_space<vmem>>, %arg3: memref<1x16xf32, #tpu.memory_space<vmem>>, %arg4: memref<16x4xf32, #tpu.memory_space<vmem>>, %arg5: memref<1x4xf32, #tpu.memory_space<vmem>>, %arg6: memref<16x1536xf32, #tpu.memory_space<vmem>>, %arg7: memref<2x1536xf32, #tpu.memory_space<vmem>>) attributes {dimension_semantics = [#tpu.dimension_semantics<parallel>], iteration_bounds = array<i64: 1>, scalar_prefetch = 0 : i64, scratch_operands = 0 : i64, tpu.core_type = #tpu.core_type<tc>, window_params = [{pipeline_mode = #tpu.pipeline_mode<synchronous>, transform_indices = @transform_0, window_bounds = array<i64: 1, 32>}, {pipeline_mode = #tpu.pipeline_mode<synchronous>, transform_indices = @transform_1, window_bounds = array<i64: 32, 16>}, {pipeline_mode = #tpu.pipeline_mode<synchronous>, transform_indices = @transform_2, window_bounds = array<i64: 1, 16>}, {pipeline_mode = #tpu.pipeline_mode<synchronous>, transform_indices = @transform_3, window_bounds = array<i64: 16, 4>}, {pipeline_mode = #tpu.pipeline_mode<synchronous>, transform_indices = @transform_4, window_bounds = array<i64: 1, 4>}, {transform_indices = @transform_5, window_bounds = array<i64: 16, 1536>}, {transform_indices = @transform_6, window_bounds = array<i64: 2, 1536>}]} {
    %c0 = arith.constant 0 : index
    %c0_0 = arith.constant 0 : index
    %0 = vector.load %arg1[%c0, %c0_0] : memref<1x32xf32, #tpu.memory_space<vmem>>, vector<1x32xf32>
    %c0_1 = arith.constant 0 : index
    %c0_2 = arith.constant 0 : index
    %1 = vector.load %arg2[%c0_1, %c0_2] : memref<32x16xf32, #tpu.memory_space<vmem>>, vector<32x16xf32>
    %cst = arith.constant dense<0.000000e+00> : vector<1x16xf32>
    %2 = tpu.matmul %0, %1, %cst {dimension_numbers = #tpu.dot_dimension_numbers<[1], [0], [0], [1], [0, 0, 1, 1], [], []>} : vector<1x32xf32>, vector<32x16xf32>, vector<1x16xf32> -> vector<1x16xf32>
    %c0_3 = arith.constant 0 : index
    %c0_4 = arith.constant 0 : index
    %3 = vector.load %arg3[%c0_3, %c0_4] : memref<1x16xf32, #tpu.memory_space<vmem>>, vector<1x16xf32>
    %4 = arith.addf %2, %3 : vector<1x16xf32>
    %cst_5 = arith.constant 0.000000e+00 : f32
    %5 = vector.broadcast %cst_5 : f32 to vector<1x16xf32>
    %6 = arith.maximumf %4, %5 : vector<1x16xf32>
    %c0_6 = arith.constant 0 : index
    %c0_7 = arith.constant 0 : index
    %7 = vector.load %arg4[%c0_6, %c0_7] : memref<16x4xf32, #tpu.memory_space<vmem>>, vector<16x4xf32>
    %cst_8 = arith.constant dense<0.000000e+00> : vector<1x4xf32>
    %8 = tpu.matmul %6, %7, %cst_8 {dimension_numbers = #tpu.dot_dimension_numbers<[1], [0], [0], [1], [0, 0, 1, 1], [], []>} : vector<1x16xf32>, vector<16x4xf32>, vector<1x4xf32> -> vector<1x4xf32>
    %c0_9 = arith.constant 0 : index
    %c0_10 = arith.constant 0 : index
    %9 = vector.load %arg5[%c0_9, %c0_10] : memref<1x4xf32, #tpu.memory_space<vmem>>, vector<1x4xf32>
    %10 = arith.addf %8, %9 : vector<1x4xf32>
    %11 = arith.negf %10 : vector<1x4xf32>
    %12 = math.exp %11 : vector<1x4xf32>
    %cst_11 = arith.constant 1.000000e+00 : f32
    %13 = vector.broadcast %cst_11 : f32 to vector<1x4xf32>
    %14 = arith.addf %13, %12 : vector<1x4xf32>
    %15 = arith.divf %13, %14 : vector<1x4xf32>
    %cst_12 = arith.constant 3.000000e+00 : f32
    %16 = vector.broadcast %cst_12 : f32 to vector<1x4xf32>
    %17 = arith.mulf %15, %16 : vector<1x4xf32>
    %cst_13 = arith.constant 1.000000e+00 : f32
    %18 = vector.broadcast %cst_13 : f32 to vector<1x4xf32>
    %19 = arith.addf %17, %18 : vector<1x4xf32>
    %20 = tpu.iota {dimensions = array<i32: 0>} : vector<2x4xi32>
    %21 = tpu.iota {dimensions = array<i32: 1>} : vector<2x4xi32>
    %c2_i32 = arith.constant 2 : i32
    %22 = vector.broadcast %c2_i32 : i32 to vector<2x4xi32>
    %23 = arith.muli %22, %20 : vector<2x4xi32>
    %24 = arith.cmpi eq, %21, %23 : vector<2x4xi32>
    %cst_14 = arith.constant 1.000000e+00 : f32
    %cst_15 = arith.constant 0.000000e+00 : f32
    %25 = vector.broadcast %cst_14 : f32 to vector<2x4xf32>
    %26 = vector.broadcast %cst_15 : f32 to vector<2x4xf32>
    %27 = arith.select %24, %25, %26 : vector<2x4xi1>, vector<2x4xf32>
    %28 = vector.broadcast %19 : vector<1x4xf32> to vector<2x4xf32>
    %29 = arith.mulf %28, %27 : vector<2x4xf32>
    %cst_16 = arith.constant dense<0.000000e+00> : vector<2xf32>
    %30 = vector.multi_reduction <add>, %29, %cst_16 [1] : vector<2x4xf32> to vector<2xf32>
    %31 = vector.shape_cast %30 : vector<2xf32> to vector<2x1xf32>
    %32 = tpu.iota {dimensions = array<i32: 1>} : vector<1x16xi32>
    %33 = arith.sitofp %32 : vector<1x16xi32> to vector<1x16xf32>
    %cst_17 = arith.constant 2.500000e-01 : f32
    %34 = vector.broadcast %cst_17 : f32 to vector<1x16xf32>
    %35 = arith.mulf %33, %34 : vector<1x16xf32>
    %36 = math.floor %35 : vector<1x16xf32>
    %cst_18 = arith.constant 4.000000e+00 : f32
    %37 = vector.broadcast %cst_18 : f32 to vector<1x16xf32>
    %38 = arith.mulf %37, %36 : vector<1x16xf32>
    %39 = arith.subf %33, %38 : vector<1x16xf32>
    %cst_19 = arith.constant 1.000000e+00 : f32
    %40 = vector.broadcast %cst_19 : f32 to vector<1x16xf32>
    %41 = arith.addf %36, %40 : vector<1x16xf32>
    %cst_20 = arith.constant 2.500000e+00 : f32
    %42 = vector.broadcast %cst_20 : f32 to vector<1x16xf32>
    %43 = arith.subf %41, %42 : vector<1x16xf32>
    %cst_21 = arith.constant 1.500000e+00 : f32
    %44 = vector.broadcast %cst_21 : f32 to vector<1x16xf32>
    %45 = arith.divf %43, %44 : vector<1x16xf32>
    %cst_22 = arith.constant 1.000000e+00 : f32
    %46 = vector.broadcast %cst_22 : f32 to vector<1x16xf32>
    %47 = arith.addf %39, %46 : vector<1x16xf32>
    %cst_23 = arith.constant 2.500000e+00 : f32
    %48 = vector.broadcast %cst_23 : f32 to vector<1x16xf32>
    %49 = arith.subf %47, %48 : vector<1x16xf32>
    %cst_24 = arith.constant 1.500000e+00 : f32
    %50 = vector.broadcast %cst_24 : f32 to vector<1x16xf32>
    %51 = arith.divf %49, %50 : vector<1x16xf32>
    %52 = arith.mulf %45, %45 : vector<1x16xf32>
    %53 = arith.mulf %51, %51 : vector<1x16xf32>
    %54 = arith.addf %52, %53 : vector<1x16xf32>
    %cst_25 = arith.constant 1.000000e+00 : f32
    %55 = vector.broadcast %cst_25 : f32 to vector<1x16xf32>
    %56 = arith.cmpf ole, %54, %55 : vector<1x16xf32>
    %cst_26 = arith.constant 1.000000e+00 : f32
    %cst_27 = arith.constant 0.000000e+00 : f32
    %57 = vector.broadcast %cst_26 : f32 to vector<1x16xf32>
    %58 = vector.broadcast %cst_27 : f32 to vector<1x16xf32>
    %59 = arith.select %56, %57, %58 : vector<1x16xi1>, vector<1x16xf32>
    %cst_28 = arith.constant 3.14159274 : f32
    %60 = vector.broadcast %cst_28 : f32 to vector<2x1xf32>
    %61 = arith.mulf %60, %31 : vector<2x1xf32>
    %62 = vector.broadcast %61 : vector<2x1xf32> to vector<2x16xf32>
    %63 = vector.broadcast %54 : vector<1x16xf32> to vector<2x16xf32>
    %64 = arith.mulf %62, %63 : vector<2x16xf32>
    %65 = math.cos %64 : vector<2x16xf32>
    %66 = vector.broadcast %59 : vector<1x16xf32> to vector<2x16xf32>
    %67 = arith.mulf %66, %65 : vector<2x16xf32>
    %68 = math.absf %67 : vector<2x16xf32>
    %69 = vector.broadcast %59 : vector<1x16xf32> to vector<2x16xf32>
    %70 = arith.mulf %68, %69 : vector<2x16xf32>
    %c0_29 = arith.constant 0 : index
    %c0_30 = arith.constant 0 : index
    %71 = vector.load %arg6[%c0_29, %c0_30] : memref<16x1536xf32, #tpu.memory_space<vmem>>, vector<16x1536xf32>
    %cst_31 = arith.constant dense<0.000000e+00> : vector<2x1536xf32>
    %72 = tpu.matmul %70, %71, %cst_31 {dimension_numbers = #tpu.dot_dimension_numbers<[1], [0], [0], [1], [0, 0, 1, 1], [], []>} : vector<2x16xf32>, vector<16x1536xf32>, vector<2x1536xf32> -> vector<2x1536xf32>
    %c0_32 = arith.constant 0 : index
    %c0_33 = arith.constant 0 : index
    %73 = vector.load %arg7[%c0_32, %c0_33] : memref<2x1536xf32, #tpu.memory_space<vmem>>, vector<2x1536xf32>
    tpu.vector_store %arg7[%c0_32, %c0_33], %72 {strides = array<i32>} : memref<2x1536xf32, #tpu.memory_space<vmem>>, vector<2x1536xf32>,
    return
  }
  func.func @transform_0(%arg0: i32) -> (i32, i32) {
    %c0_i32 = arith.constant 0 : i32
    %c0_i32_0 = arith.constant 0 : i32
    %c0_i32_1 = arith.constant 0 : i32
    return %c0_i32, %c0_i32_0 : i32, i32
  }
  func.func @transform_1(%arg0: i32) -> (i32, i32) {
    %c0_i32 = arith.constant 0 : i32
    %c0_i32_0 = arith.constant 0 : i32
    %c0_i32_1 = arith.constant 0 : i32
    return %c0_i32, %c0_i32_0 : i32, i32
  }
  func.func @transform_2(%arg0: i32) -> (i32, i32) {
    %c0_i32 = arith.constant 0 : i32
    %c0_i32_0 = arith.constant 0 : i32
    %c0_i32_1 = arith.constant 0 : i32
    return %c0_i32, %c0_i32_0 : i32, i32
  }
  func.func @transform_3(%arg0: i32) -> (i32, i32) {
    %c0_i32 = arith.constant 0 : i32
    %c0_i32_0 = arith.constant 0 : i32
    %c0_i32_1 = arith.constant 0 : i32
    return %c0_i32, %c0_i32_0 : i32, i32
  }
  func.func @transform_4(%arg0: i32) -> (i32, i32) {
    %c0_i32 = arith.constant 0 : i32
    %c0_i32_0 = arith.constant 0 : i32
    %c0_i32_1 = arith.constant 0 : i32
    return %c0_i32, %c0_i32_0 : i32, i32
  }
  func.func @transform_5(%arg0: i32) -> (i32, i32) {
    %c0_i32 = arith.constant 0 : i32
    %c0_i32_0 = arith.constant 0 : i32
    return %c0_i32, %arg0 : i32, i32
  }
  func.func @transform_6(%arg0: i32) -> (i32, i32) {
    %c0_i32 = arith.constant 0 : i32
    %c0_i32_0 = arith.constant 0 : i32
    return %c0_i32, %arg0 : i32, i32
  }
}

</mosaic_0001>

<bundles_post_ra>
// kernel: main_model_forward.1
= control target key start
LH: loop header
LB: loop body
LE: loop exit
PB: predicated region body
PF: predicated region fallthrough
CT: control target
= control target key end

     0   :  { %vm29_vm0 = vcmask 261120   ;;  %vm57_vm1 = vcmask 130048   ;;  %v102_v17 = vlaneseq  ;;  %v642_v33 = vmov 0.0   ;;  %s895_s1 = inlined_call_operand.vmem [shape: f32[32,16], index: 1, kind: input, shape index: {}]   ;;  %s896_s0 = inlined_call_operand.vmem [shape: f32[1,32], index: 0, kind: input, shape index: {}]   ;;  %s897_s3 = inlined_call_operand.vmem [shape: f32[16,4], index: 3, kind: input, shape index: {}]   ;;  %s898_s2 = inlined_call_operand.vmem [shape: f32[1,16], index: 2, kind: input, shape index: {}]   ;;  %s899_s4 = inlined_call_operand.vmem [shape: f32[1,4], index: 4, kind: input, shape index: {}]   ;;  %s900_s5 = inlined_call_operand.vmem [shape: f32[16,1536], index: 5, kind: input, shape index: {}]   ;;  %s901_s6 = inlined_call_operand.vmem [shape: f32[2,1536], index: 6, kind: output, shape index: {}]  }
   0x1   :  { %v27_v0 = vld [vmem:[%s895_s1 + $0x18] sm:$0xff]  ;;  %v26_v1 = vld [vmem:[%s895_s1 + $0x10] sm:$0xff]  ;;  %v25_v2 = vld [vmem:[%s895_s1 + $0x8] sm:$0xff]  ;;  %vm111_vm7 = vcmask 25600   ;;  %v643_v39 = vmov 1.5  }
   0x2   :  { %45 = vmatpush.msra.mxu0 %v27_v0  ;;  %v24_v3 = vld [vmem:[%s895_s1] sm:$0xff]  ;;  %v55_v5 = vld [vmem:[%s897_s3 + $0x8] sm:$0xff]  ;;  %v103_v21 = vshrl.u32 %v102_v17, 7  ;;  %v105_v26 = vand.u32 127, %v102_v17  ;;  %v647_v17 = vmov 2102212464  }
   0x3   :  { %v23_v4 = vld [vmem:[%s896_s0] sm:$0x1]  ;;  %75 = vmatpush.msra.mxu1 %v55_v5 }
   0x4   :  { %46 = vmatpush.msra.mxu0 %v26_v1  ;;  %v54_v6 = vld [vmem:[%s897_s3] sm:$0xff]  ;;  %v106_v27 = vmul.u32 2, %v103_v21  ;;  %v115_v38 = vcvt.s32.f32 %v105_v26 }
   0x5   :  { %76 = vmatpush.msra.mxu1 %v54_v6  ;;  %v28_v7 = vld [vmem:[%s898_s2] sm:$0x1] }
   0x6   :  { %47 = vmatpush.msra.mxu0 %v25_v2  ;;  %v56_v11 = vld [vmem:[%s899_s4] sm:$0x1]  ;;  %vm107_vm6 = vcmp.eq.s32.totalorder %v105_v26, %v106_v27  ;;  %v116_v40 = vmul.f32 0.25, %v115_v38 }
   0x7   :  { %v108_v34 = vsel %vm107_vm6, 1.0, %v642_v33 }
   0x8   :  { %48 = vmatpush.msra.mxu0 %v24_v3  ;;  %v117_v42 = vfloor.f32 %v116_v40 }
   0x9   :  { %607 = vmatmul.msk.f32.vlgmr.msra.gmra.mxu0 %vm29_vm0, %v23_v4 }
   0xa   :  { %v118_v44 = vmul.f32 4.0, %v117_v42  ;;  %v120_v48 = vadd.f32 1.0, %v117_v42 }
   0xc   :  { %v119_v46 = vsub.f32 %v115_v38, %v118_v44  ;;  %v610_v51 = vadd.f32 -2.5, %v120_v48 }
   0xe   :  { %v130_v49 = vadd.f32 1.0, %v119_v46 }
  0x10   :  { %v611_v52 = vadd.f32 -2.5, %v130_v49 }
  0x86   :  { %v50_v8 = vpop.f32.mrf.mxu0 }
  0x87   :  { %v51_v9 = vadd.f32 %v50_v8, %v28_v7 }
  0x89   :  { %v53_v10 = vmax.f32 %v51_v9, 0.0  ;;  %v644_v9 = vmov 683565275  }
  0x8b   :  { %608 = vmatmul.msk.f32.vlgmr.msra.gmra.mxu1 %vm57_vm1, %v53_v10 }
 0x108   :  { %v78_v12 = vpop.f32.mrf.mxu1 }
 0x109   :  { %v79_v13 = vadd.f32 %v78_v12, %v56_v11  ;;  %v645_v11 = vmov 2475754826  }
 0x10b   :  { %v609_v14 = vmul.f32 -1.442695, %v79_v13 }
 0x10d   :  { %636 = vpow2.f32 %v609_v14  ;;  %v646_v14 = vmov 2131351028  }
 0x113   :  { %v637_v15 = vpop.eup %636 }
 0x114   :  { %v84_v16 = vadd.f32 1.0, %v637_v15 }
 0x116   :  { %638 = vrcp.f32 %v84_v16  ;;  %v96_v22 = vand.u32 2147483648, %v84_v16  ;;  %v94_v24 = vand.u32 2147483647, %v84_v16  ;;  %vm90_vm3 = vweird.f32 %v84_v16 }
 0x117   :  { %640 = vrcp.f32 %v643_v39 }
 0x118   :  { %v97_v28 = vor.u32 1.1754944e-38, %v96_v22  ;;  %vm95_vm5 = vcmp.eq.f32.partialorder %v94_v24, 8.507059e+37 }
 0x11c   :  { %v639_v18 = vpop.eup %638 }
 0x11d   :  { %v86_v19 = vmul.f32 %v639_v18, %v84_v16  ;;  %vm91_vm2 = vweird.f32 %v639_v18  ;;  %v641_v41 = vpop.eup %640 }
 0x11e   :  { %vm92_vm4 = vmor %vm90_vm3, %vm91_vm2  ;;  %v123_v43 = vmul.f32 1.5, %v641_v41  ;;  %vm127_vm8 = vweird.f32 %v641_v41 }
 0x11f   :  { %v87_v20 = vsub.f32 1.0, %v86_v19 }
 0x120   :  { %v124_v45 = vsub.f32 1.0, %v123_v43 }
 0x121   :  { %v88_v23 = vmul.f32 %v639_v18, %v87_v20  ;;  %v648_v20 = vmov 920167782  }
 0x122   :  { %v125_v47 = vmul.f32 %v641_v41, %v124_v45 }
 0x123   :  { %v89_v25 = vadd.f32 %v639_v18, %v88_v23  ;;  %v649_v23 = vmov 1326507024  }
 0x124   :  { %v126_v50 = vadd.f32 %v641_v41, %v125_v47 }
 0x125   :  { %v93_v29 = vsel %vm92_vm4, %v639_v18, %v89_v25 }
 0x126   :  { %v98_v30 = vsel %vm95_vm5, %v97_v28, %v93_v29  ;;  %v128_v53 = vsel %vm127_vm8, %v641_v41, %v126_v50 }
 0x127   :  { %v100_v31 = vmul.f32 3.0, %v98_v30  ;;  %v129_v54 = vmul.f32 %v610_v51, %v128_v53  ;;  %v132_v55 = vmul.f32 %v611_v52, %v128_v53 }
 0x129   :  { %v101_v32 = vadd.f32 1.0, %v100_v31  ;;  %v133_v56 = vmul.f32 %v129_v54, %v129_v54  ;;  %v134_v57 = vmul.f32 %v132_v55, %v132_v55 }
 0x12b   :  { %v109_v35 = vperm.slane %v101_v32, 0  ;;  %v715_v58 = vadd.f32 %v134_v57, %v133_v56 }
 0x12d   :  { %v110_v36 = vmul.f32 %v109_v35, %v108_v34  ;;  %vm136_vm8 = vcmp.le.f32.partialorder %v715_v58, 1.0 }
 0x12f   :  { %v112_v37 = vsel %vm111_vm7, %v110_v36, 0.0 }
 0x130   :  { %113 = vadd.xlane.f32.xlu0 %v112_v37 }
 0x1a3   :  { %v114_v59 = vpop.xlane.xlu0 %113 }
 0x1a4   :  { %v138_v60 = vmul.f32 3.1415927, %v114_v59  ;;  %v650_v59 = vmov 0  }
 0x1a6   :  { %v718_v61 = vmul.f32 %v138_v60, %v715_v58  ;;  %v317_v58 = vld [vmem:[%s900_s5 + $0xa0] sm:$0xff] }
 0x1a8   :  { %v143_v62 = vand.u32 2139095040, %v718_v61  ;;  %v140_v1 = vand.u32 2147483647, %v718_v61  ;;  %vm142_vm6 = vcmp.lt.s32.totalorder %v718_v61, 0 }
 0x1aa   :  { %v144_v63 = vshrl.u32 %v143_v62, 23  ;;  %v147_v3 = vand.u32 8388607, %v140_v1  ;;  %vm817_vm7 = vcmp.le.f32.partialorder %v140_v1, 0.7853982 }
 0x1ac   :  { %v612_v0 = vadd.s32 4294967169, %v144_v63  ;;  %v148_v7 = vor.u32 8388608, %v147_v3 }
 0x1ae   :  { %v150_v2 = vadd.s32 1, %v612_v0  ;;  %v735_v30 = vshll.u32 %v148_v7, 8 }
 0x1b0   :  { %vm151_vm9 = vcmp.gt.s32.totalorder %v150_v2, 0  ;;  %v189_v40 = vand.u32 65535, %v735_v30  ;;  %v190_v41 = vshrl.u32 %v735_v30, 16 }
 0x1b1   :  { %v152_v4 = vsel %vm151_vm9, %v150_v2, 0 }
 0x1b2   :  { %v154_v5 = vand.u32 31, %v152_v4  ;;  %v726_v8 = vshrl.u32 %v152_v4, 5 }
 0x1b4   :  { %v724_v6 = vsub.s32 32, %v154_v5  ;;  %v157_v10 = vshll.u32 %v644_v9, %v154_v5  ;;  %v160_v12 = vshll.u32 %v645_v11, %v154_v5  ;;  %v163_v16 = vshll.u32 %v646_v14, %v154_v5 }
 0x1b5   :  { %v166_v19 = vshll.u32 %v647_v17, %v154_v5  ;;  %v169_v22 = vshll.u32 %v648_v20, %v154_v5  ;;  %vm172_vm10 = vcmp.lt.s32.totalorder %v726_v8, 1  ;;  %vm175_vm11 = vcmp.lt.s32.totalorder %v726_v8, 4 }
 0x1b6   :  { %v158_v13 = vshrl.u32 %v645_v11, %v724_v6  ;;  %v161_v15 = vshrl.u32 %v646_v14, %v724_v6  ;;  %v164_v18 = vshrl.u32 %v647_v17, %v724_v6  ;;  %v167_v21 = vshrl.u32 %v648_v20, %v724_v6 }
 0x1b7   :  { %v170_v24 = vshrl.u32 %v649_v23, %v724_v6  ;;  %vm174_vm12 = vcmp.lt.s32.totalorder %v726_v8, 3  ;;  %vm173_vm13 = vcmp.lt.s32.totalorder %v726_v8, 2  ;;  %v156_v7 = vshrl.u32 %v644_v9, %v724_v6 }
 0x1b8   :  { %v159_v25 = vor.u32 %v158_v13, %v157_v10  ;;  %v162_v26 = vor.u32 %v161_v15, %v160_v12  ;;  %v165_v27 = vor.u32 %v164_v18, %v163_v16  ;;  %v168_v28 = vor.u32 %v167_v21, %v166_v19 }
 0x1b9   :  { %v171_v29 = vor.u32 %v170_v24, %v169_v22 }
 0x1ba   :  { %v180_v31 = vsel %vm172_vm10, %v159_v25, %v162_v26  ;;  %v184_v32 = vsel %vm172_vm10, %v162_v26, %v165_v27  ;;  %v181_v34 = vsel %vm175_vm11, %v168_v28, 920167782  ;;  %v177_v3 = vsel %vm175_vm11, %v165_v27, 2102212464 }
 0x1bb   :  { %v185_v35 = vsel %vm175_vm11, %v171_v29, 1326507024  ;;  %v182_v36 = vsel %vm174_vm12, %v165_v27, %v181_v34  ;;  %v176_v15 = vsel %vm172_vm10, %v156_v7, %v159_v25  ;;  %v178_v16 = vsel %vm174_vm12, %v162_v26, %v177_v3 }
 0x1bc   :  { %v186_v37 = vsel %vm174_vm12, %v168_v28, %v185_v35  ;;  %v183_v38 = vsel %vm173_vm13, %v180_v31, %v182_v36  ;;  %v179_v6 = vsel %vm173_vm13, %v176_v15, %v178_v16  ;;  %vm283_vm12 = vweird.f32 %v718_v61 }
 0x1bd   :  { %v187_v39 = vsel %vm173_vm13, %v184_v32, %v186_v37  ;;  %v213_v44 = vand.u32 65535, %v183_v38  ;;  %v214_v45 = vshrl.u32 %v183_v38, 16  ;;  %v233_v24 = vmul.u32 %v735_v30, %v179_v6 }
 0x1be   :  { %v191_v42 = vand.u32 65535, %v187_v39  ;;  %v192_v43 = vshrl.u32 %v187_v39, 16  ;;  %vm587_vm13 = vcmask 1045508  }
 0x1bf   :  { %v216_v48 = vmul.u32 %v214_v45, %v189_v40  ;;  %v217_v49 = vmul.u32 %v213_v44, %v190_v41  ;;  %v215_v53 = vmul.u32 %v213_v44, %v189_v40  ;;  %v218_v57 = vmul.u32 %v214_v45, %v190_v41 }
 0x1c0   :  { %v194_v46 = vmul.u32 %v192_v43, %v189_v40  ;;  %v195_v47 = vmul.u32 %v191_v42, %v190_v41  ;;  %v193_v50 = vmul.u32 %v191_v42, %v189_v40  ;;  %v196_v52 = vmul.u32 %v192_v43, %v190_v41 }
 0x1c1   :  { %v219_v54 = vshll.u32 %v216_v48, 16  ;;  %v221_v62 = vshll.u32 %v217_v49, 16  ;;  %v220_v13 = vshrl.u32 %v216_v48, 16  ;;  %v222_v19 = vshrl.u32 %v217_v49, 16  ;;  %v310_v48 = vld [vmem:[%s900_s5 + $0x68] sm:$0xff]  ;;  %v311_v49 = vld [vmem:[%s900_s5 + $0x70] sm:$0xff] }
 0x1c2   :  { %v197_v51 = vshll.u32 %v194_v46, 16  ;;  %v199_v55 = vshll.u32 %v195_v47, 16  ;;  %v198_v10 = vshrl.u32 %v194_v46, 16  ;;  %v200_v17 = vshrl.u32 %v195_v47, 16  ;;  %v309_v47 = vld [vmem:[%s900_s5 + $0x60] sm:$0xff]  ;;  %358 = vmatpush.msra.mxu3 %v310_v48  ;;  %378 = vmatpush.msrb.mxu1 %v311_v49 }
 0x1c3   :  { %vm223_vm15 = vc.u32 %v215_v53, %v219_v54  ;;  %v225_v63 = vadd.s32 %v219_v54, %v215_v53  ;;  %338 = vmatpush.msra.mxu2 %v309_v47  ;;  %v299_v54 = vld [vmem:[%s900_s5 + $0x10] sm:$0xff] }
 0x1c4   :  { %vm201_vm14 = vc.u32 %v193_v50, %v197_v51  ;;  %v203_v56 = vadd.s32 %v197_v51, %v193_v50  ;;  %v224_v2 = vsel %vm223_vm15, 1, %v650_v59  ;;  %v314_v50 = vld [vmem:[%s900_s5 + $0x88] sm:$0xff]  ;;  %v297_v51 = vld [vmem:[%s900_s5] sm:$0xff]  ;;  %379 = vmatpush.msrb.mxu1 %v299_v54  ;;  %vm589_vm15 = vcmask 1043456  }
 0x1c5   :  { %v202_v60 = vsel %vm201_vm14, 1, %v650_v59  ;;  %v226_v5 = vadd.s32 %v224_v2, %v218_v57  ;;  %vm227_vm2 = vc.u32 %v225_v63, %v221_v62  ;;  %v229_v22 = vadd.s32 %v225_v63, %v221_v62  ;;  %438 = vmatpush.msrb.mxu0 %v314_v50  ;;  %339 = vmatpush.msra.mxu2 %v297_v51  ;;  %v312_v57 = vld [vmem:[%s900_s5 + $0x78] sm:$0xff]  ;;  %v315_v62 = vld [vmem:[%s900_s5 + $0x90] sm:$0xff]  ;;  %v318_v63 = vld [vmem:[%s900_s5 + $0xa8] sm:$0xff] }
 0x1c6   :  { %v204_v0 = vadd.s32 %v202_v60, %v196_v52  ;;  %vm205_vm0 = vc.u32 %v203_v56, %v199_v55  ;;  %v228_v12 = vsel %vm227_vm2, 1, %v650_v59  ;;  %v298_v52 = vld [vmem:[%s900_s5 + $0x8] sm:$0xff]  ;;  %v313_v60 = vld [vmem:[%s900_s5 + $0x80] sm:$0xff]  ;;  %458 = vmatpush.msra.mxu1 %v315_v62  ;;  %vm585_vm14 = vcmask 1041408  }
 0x1c7   :  { %v206_v4 = vsel %vm205_vm0, 1, %v650_v59  ;;  %v230_v14 = vadd.s32 %v228_v12, %v226_v5  ;;  %v302_v55 = vld [vmem:[%s900_s5 + $0x28] sm:$0xff]  ;;  %359 = vmatpush.msra.mxu3 %v298_v52  ;;  %v300_v59 = vld [vmem:[%s900_s5 + $0x18] sm:$0xff]  ;;  %398 = vmatpush.msrb.mxu2 %v312_v57 }
 0x1c8   :  { %v208_v11 = vadd.s32 %v206_v4, %v204_v0  ;;  %439 = vmatpush.msrb.mxu0 %v302_v55  ;;  %v301_v0 = vld [vmem:[%s900_s5 + $0x20] sm:$0xff]  ;;  %v303_v4 = vld [vmem:[%s900_s5 + $0x30] sm:$0xff]  ;;  %v306_v5 = vld [vmem:[%s900_s5 + $0x48] sm:$0xff] }
 0x1c9   :  { %v231_v20 = vadd.s32 %v230_v14, %v220_v13  ;;  %418 = vmatpush.msrb.mxu3 %v313_v60  ;;  %399 = vmatpush.msrb.mxu2 %v300_v59 }
 0x1ca   :  { %v209_v18 = vadd.s32 %v208_v11, %v198_v10  ;;  %518 = vmatpush.msra.mxu0 %v318_v63  ;;  %459 = vmatpush.msra.mxu1 %v303_v4 }
 0x1cb   :  { %v232_v9 = vadd.s32 %v231_v20, %v222_v19  ;;  %419 = vmatpush.msrb.mxu3 %v301_v0 }
 0x1cc   :  { %v210_v21 = vadd.s32 %v209_v18, %v200_v17  ;;  %519 = vmatpush.msra.mxu0 %v306_v5 }
 0x1cd   :  { %v236_v23 = vadd.s32 1, %v232_v9 }
 0x1ce   :  { %vm235_vm3 = vc.u32 %v210_v21, %v229_v22  ;;  %v234_v37 = vadd.s32 %v229_v22, %v210_v21 }
 0x1cf   :  { %v237_v27 = vsel %vm235_vm3, %v236_v23, %v232_v9 }
 0x1d0   :  { %v238_v28 = vadd.s32 %v237_v27, %v233_v24 }
 0x1d2   :  { %v239_v25 = vadd.s32 536870912, %v238_v28 }
 0x1d4   :  { %v769_v29 = vshrl.u32 %v239_v25, 30  ;;  %v137_v25 = vsel %vm136_vm8, 1.0, %v642_v33  ;;  %v319_v33 = vld [vmem:[%s900_s5 + $0xb0] sm:$0xff] }
 0x1d6   :  { %v241_v26 = vshll.u32 %v769_v29, 30  ;;  %v264_v12 = vsub.s32 4, %v769_v29 }
 0x1d8   :  { %v242_v31 = vsub.s32 %v238_v28, %v241_v26  ;;  %v265_v17 = vsel %vm142_vm6, %v264_v12, %v769_v29 }
 0x1d9   :  { %v267_v20 = vsel %vm817_vm7, 0, %v265_v17 }
 0x1da   :  { %vm243_vm4 = vcmp.lt.s32.totalorder %v242_v31, 0  ;;  %v244_v32 = vsub.s32 0, %v242_v31  ;;  %v284_v23 = vand.u32 3, %v267_v20 }
 0x1dc   :  { %v245_v34 = vsel %vm243_vm4, %v244_v32, %v242_v31  ;;  %vm286_vm9 = vcmp.eq.s32.totalorder %v284_v23, 0  ;;  %vm289_vm10 = vcmp.eq.s32.totalorder %v284_v23, 2  ;;  %vm285_vm11 = vcmp.lt.s32.totalorder %v284_v23, 2 }
 0x1dd   :  { %v246_v35 = vclz %v245_v34 }
 0x1df   :  { %v613_v36 = vadd.s32 4294967294, %v246_v35 }
 0x1e1   :  { %vm614_vm5 = vcmp.lt.s32.totalorder %v613_v36, 0 }
 0x1e2   :  { %v249_v8 = vsel %vm614_vm5, 0, %v613_v36 }
 0x1e3   :  { %v250_v38 = vsub.s32 32, %v249_v8  ;;  %v254_v39 = vsub.s32 4294967266, %v249_v8  ;;  %v251_v40 = vshll.u32 %v242_v31, %v249_v8  ;;  %v316_v8 = vld [vmem:[%s900_s5 + $0x98] sm:$0xff] }
 0x1e5   :  { %v252_v30 = vshrl.u32 %v234_v37, %v250_v38  ;;  %v255_v41 = vadd.s32 127, %v254_v39  ;;  %v305_v37 = vld [vmem:[%s900_s5 + $0x40] sm:$0xff]  ;;  %v307_v38 = vld [vmem:[%s900_s5 + $0x50] sm:$0xff]  ;;  %v320_v39 = vld [vmem:[%s900_s5 + $0xb8] sm:$0xff] }
 0x1e7   :  { %v253_v42 = vor.u32 %v252_v30, %v251_v40  ;;  %v256_v43 = vshll.u32 %v255_v41, 23  ;;  %v308_v40 = vld [vmem:[%s900_s5 + $0x58] sm:$0xff] }
 0x1e9   :  { %v257_v44 = vor.u32 4788187, %v256_v43  ;;  %v260_v46 = vcvt.s32.f32 %v253_v42 }
 0x1eb   :  { %v258_v45 = vand.u32 2147483647, %v257_v44 }
 0x1ed   :  { %v261_v53 = vmul.f32 %v260_v46, %v258_v45 }
 0x1ef   :  { %v262_v56 = vxor.u32 2147483648, %v261_v53 }
 0x1f1   :  { %v263_v3 = vsel %vm142_vm6, %v262_v56, %v261_v53 }
 0x1f2   :  { %v266_v1 = vsel %vm817_vm7, %v718_v61, %v263_v3  ;;  %v304_v61 = vld [vmem:[%s900_s5 + $0x38] sm:$0xff] }
 0x1f3   :  { %v268_v7 = vmul.f32 %v266_v1, %v266_v1 }
 0x1f5   :  { %v269_v10 = vmul.f32 -0.001358992, %v268_v7  ;;  %v276_v11 = vmul.f32 -0.00019511016, %v268_v7 }
 0x1f7   :  { %v270_v13 = vadd.f32 0.041655596, %v269_v10  ;;  %v277_v14 = vadd.f32 0.008332121, %v276_v11 }
 0x1f9   :  { %v271_v15 = vmul.f32 %v270_v13, %v268_v7  ;;  %v278_v16 = vmul.f32 %v277_v14, %v268_v7 }
 0x1fb   :  { %v272_v18 = vadd.f32 -0.4999988, %v271_v15  ;;  %v279_v19 = vadd.f32 -0.16666654, %v278_v16 }
 0x1fd   :  { %v273_v21 = vmul.f32 %v272_v18, %v268_v7  ;;  %v280_v22 = vmul.f32 %v279_v19, %v268_v7 }
 0x1ff   :  { %v274_v6 = vadd.f32 1.0, %v273_v21  ;;  %v281_v9 = vadd.f32 1.0, %v280_v22 }
 0x201   :  { %v282_v24 = vmul.f32 %v281_v9, %v266_v1  ;;  %v290_v27 = vxor.u32 2147483648, %v274_v6 }
 0x203   :  { %v287_v28 = vxor.u32 2147483648, %v282_v24  ;;  %v291_v26 = vsel %vm289_vm10, %v290_v27, %v282_v24 }
 0x205   :  { %v288_v29 = vsel %vm286_vm9, %v274_v6, %v287_v28 }
 0x206   :  { %v292_v31 = vsel %vm285_vm11, %v288_v29, %v291_v26 }
 0x207   :  { %v293_v32 = vsel %vm283_vm12, nan, %v292_v31 }
 0x208   :  { %v294_v34 = vmul.f32 %v293_v32, %v137_v25 }
 0x20a   :  { %v295_v35 = vand.u32 2147483647, %v294_v34 }
 0x20c   :  { %v296_v36 = vmul.f32 %v295_v35, %v137_v25 }
 0x20e   :  { %615 = vmatmul.msk.f32.vlgmr.msra.gmra.mxu2 %vm57_vm1, %v296_v36  ;;  %616 = vmatmul.msk.f32.vlgmr.msra.gmra.mxu3 %vm57_vm1, %v296_v36 }
 0x20f   :  { %617 = vmatmul.msk.f32.vlgmr.msrb.gmra.mxu1 %vm57_vm1, %v296_v36  ;;  %620 = vmatmul.msk.f32.vlgmr.msrb.gmra.mxu0 %vm57_vm1, %v296_v36 }
 0x210   :  { %478 = vmatpush.msra.mxu2 %v316_v8  ;;  %498 = vmatpush.msra.mxu3 %v317_v58 }
 0x211   :  { %538 = vmatpush.msrb.mxu1 %v319_v33 }
 0x212   :  { %479 = vmatpush.msra.mxu2 %v304_v61  ;;  %499 = vmatpush.msra.mxu3 %v305_v37 }
 0x213   :  { %539 = vmatpush.msrb.mxu1 %v307_v38 }
 0x216   :  { %618 = vmatmul.msk.f32.vlgmr.msrb.gmra.mxu2 %vm57_vm1, %v296_v36  ;;  %619 = vmatmul.msk.f32.vlgmr.msrb.gmra.mxu3 %vm57_vm1, %v296_v36 }
 0x217   :  { %621 = vmatmul.msk.f32.vlgmr.msra.gmra.mxu1 %vm57_vm1, %v296_v36  ;;  %624 = vmatmul.msk.f32.vlgmr.msra.gmra.mxu0 %vm57_vm1, %v296_v36 }
 0x218   :  { %558 = vmatpush.msrb.mxu2 %v320_v39 }
 0x21a   :  { %559 = vmatpush.msrb.mxu2 %v308_v40 }
 0x21e   :  { %622 = vmatmul.msk.f32.vlgmr.msra.gmra.mxu2 %vm57_vm1, %v296_v36  ;;  %623 = vmatmul.msk.f32.vlgmr.msra.gmra.mxu3 %vm57_vm1, %v296_v36 }
 0x21f   :  { %625 = vmatmul.msk.f32.vlgmr.msrb.gmra.mxu1 %vm57_vm1, %v296_v36 }
 0x226   :  { %626 = vmatmul.msk.f32.vlgmr.msrb.gmra.mxu2 %vm57_vm1, %v296_v36 }
 0x28c   :  { %v381_v41 = vpop.f32.mrf.mxu1  ;;  %v441_v49 = vpop.f32.mrf.mxu0 }
 0x28d   :  { %v577_v45 = vrot.slane %v381_v41, 4  ;;  %v579_v54 = vrot.slane %v441_v49, 6 }
 0x291   :  { %v341_v30 = vpop.f32.mrf.mxu2  ;;  %v361_v42 = vpop.f32.mrf.mxu3 }
 0x292   :  { %v576_v43 = vrot.slane %v361_v42, 6 }
 0x294   :  { %v586_v48 = vsel %vm585_vm14, %v341_v30, %v576_v43  ;;  %v461_v50 = vpop.f32.mrf.mxu1  ;;  %v521_v62 = vpop.f32.mrf.mxu0 }
 0x295   :  { %v580_v55 = vrot.slane %v461_v50, 4  ;;  %v582_v3 = vrot.slane %v521_v62, 6 }
 0x299   :  { %v401_v44 = vpop.f32.mrf.mxu2  ;;  %v421_v52 = vpop.f32.mrf.mxu3 }
 0x29a   :  { %v578_v46 = vrot.slane %v401_v44, 2  ;;  %v591_v57 = vsel %vm585_vm14, %v421_v52, %v579_v54 }
 0x29c   :  { %v588_v47 = vsel %vm587_vm13, %v577_v45, %v578_v46  ;;  %v541_v63 = vpop.f32.mrf.mxu1 }
 0x29d   :  { %v590_v51 = vsel %vm589_vm15, %v586_v48, %v588_v47  ;;  %v583_v4 = vrot.slane %v541_v63, 4 }
 0x29e   :  { %600 = vst [vmem:[%s901_s6] sm:$0xff] %v590_v51 }
 0x2a1   :  { %v481_v53 = vpop.f32.mrf.mxu2  ;;  %v501_v0 = vpop.f32.mrf.mxu3 }
 0x2a2   :  { %v581_v56 = vrot.slane %v481_v53, 2  ;;  %v594_v1 = vsel %vm585_vm14, %v501_v0, %v582_v3 }
 0x2a4   :  { %v592_v59 = vsel %vm587_vm13, %v580_v55, %v581_v56 }
 0x2a5   :  { %v593_v60 = vsel %vm589_vm15, %v591_v57, %v592_v59 }
 0x2a6   :  { %601 = vst [vmem:[%s901_s6 + $0x8] sm:$0xff] %v593_v60 }
 0x2a9   :  { %v561_v2 = vpop.f32.mrf.mxu2 }
 0x2aa   :  { %v584_v5 = vrot.slane %v561_v2, 2 }
 0x2ac   :  { %v595_v7 = vsel %vm587_vm13, %v583_v4, %v584_v5 }
 0x2ad   :  { %v596_v10 = vsel %vm589_vm15, %v594_v1, %v595_v7 }
 0x2ae   :  { %602 = vst [vmem:[%s901_s6 + $0x10] sm:$0xff] %v596_v10 }

// kernel: squeeze.2
= control target key start
LH: loop header
LB: loop body
LE: loop exit
PB: predicated region body
PF: predicated region fallthrough
CT: control target
= control target key end

     0   :  { %s153_s8 = smov 96   ;;  %s154_s9 = smov 112   ;;  %vm3_vm0 = vcmask 130048   ;;  %s293_s0 = inlined_call_operand.vmem [shape: f32[1536], index: 0, kind: input, shape index: {}]   ;;  %s294_s1 = inlined_call_operand.vmem [shape: f32[2,3,16,16], index: 1, kind: output, shape index: {}]  }
   0x1   :  { %v26_v0 = vld [vmem:[%s293_s0] sm:$0xff]   ;;  %s155_s10 = smov 80   ;;  %v124_v1 = vld [vmem:[%s293_s0 + $0x8] sm:$0xf]   ;;  %s156_s23 = smov 64  }
   0x2   :  { %27 = vrot.lane.b32.xlu1 %v26_v0, %s153_s8  ;;  %12 = vrot.lane.b32.xlu0 %v26_v0, %s154_s9  ;;  %4 = vst.msk [vmem:[%s294_s1] ss:$8 sm:$0xf] %vm3_vm0, %v26_v0   ;;  %v120_v2 = vld [vmem:[%s293_s0 + $0x8] sm:$0xf]   ;;  %s157_s24 = smov 48  }
   0x3   :  { %42 = vrot.lane.b32.xlu2 %v26_v0, %s155_s10  ;;  %5 = vst.msk [vmem:[%s294_s1] ss:$8 sm:$0xf0] %vm3_vm0, %v26_v0   ;;  %v128_v3 = vld [vmem:[%s293_s0 + $0x8] sm:$0xf]   ;;  %s158_s29 = smov 32  }
   0x4   :  { %v132_v4 = vld [vmem:[%s293_s0 + $0x8] sm:$0xf]   ;;  %s159_s3 = smov 16  }
   0x5   :  { %v136_v5 = vld [vmem:[%s293_s0 + $0x8] sm:$0xf]  }
   0x6   :  { %v140_v6 = vld [vmem:[%s293_s0 + $0x8] sm:$0xf]  }
   0x7   :  { %v144_v7 = vld [vmem:[%s293_s0 + $0x8] sm:$0xf]  }
   0x8   :  { %v116_v14 = vld [vmem:[%s293_s0 + $0x8] sm:$0xf]  }
   0x9   :  { %117 = vst.msk [vmem:[%s294_s1 + $0x40] ss:$8 sm:$0xf] %vm3_vm0, %v116_v14  }
   0xa   :  { %36 = vrot.lane.b32.xlu1 %v124_v1, %s153_s8  ;;  %21 = vrot.lane.b32.xlu0 %v120_v2, %s154_s9 }
   0xb   :  { %51 = vrot.lane.b32.xlu2 %v128_v3, %s155_s10 }
  0x12   :  { %66 = vrot.lane.b32.xlu1 %v132_v4, %s156_s23  ;;  %57 = vrot.lane.b32.xlu0 %v26_v0, %s156_s23 }
  0x13   :  { %72 = vrot.lane.b32.xlu2 %v26_v0, %s157_s24 }
  0x1a   :  { %87 = vrot.lane.b32.xlu1 %v26_v0, %s158_s29  ;;  %81 = vrot.lane.b32.xlu0 %v136_v5, %s157_s24 }
  0x1b   :  { %96 = vrot.lane.b32.xlu2 %v140_v6, %s158_s29 }
  0x22   :  { %111 = vrot.lane.b32.xlu1 %v144_v7, %s159_s3  ;;  %102 = vrot.lane.b32.xlu0 %v26_v0, %s159_s3 }
  0x5d   :  { %v43_v8 = vpop.permute.xlu2 %42  }
  0x5e   :  { %126 = vst.msk [vmem:[%s294_s1 + $0x3] ss:$8 sm:$0xf] %vm3_vm0, %v43_v8  }
  0x5f   :  { %127 = vst.msk [vmem:[%s294_s1 + $0x3] ss:$8 sm:$0xf0] %vm3_vm0, %v43_v8  }
  0x65   :  { %v52_v9 = vpop.permute.xlu2 %51  }
  0x66   :  { %129 = vst.msk [vmem:[%s294_s1 + $0x43] ss:$8 sm:$0xf] %vm3_vm0, %v52_v9  }
  0x6d   :  { %v73_v10 = vpop.permute.xlu2 %72  }
  0x6e   :  { %134 = vst.msk [vmem:[%s294_s1 + $0x5] ss:$8 sm:$0xf] %vm3_vm0, %v73_v10  }
  0x6f   :  { %135 = vst.msk [vmem:[%s294_s1 + $0x5] ss:$8 sm:$0xf0] %vm3_vm0, %v73_v10  }
  0x74   :  { %v28_v11 = vpop.permute.xlu1 %27   ;;  %v13_v12 = vpop.permute.xlu0 %12  }
  0x75   :  { %122 = vst.msk [vmem:[%s294_s1 + $0x2] ss:$8 sm:$0xf] %vm3_vm0, %v28_v11   ;;  %v97_v13 = vpop.permute.xlu2 %96  }
  0x76   :  { %123 = vst.msk [vmem:[%s294_s1 + $0x2] ss:$8 sm:$0xf0] %vm3_vm0, %v28_v11  }
  0x77   :  { %118 = vst.msk [vmem:[%s294_s1 + $0x1] ss:$8 sm:$0xf] %vm3_vm0, %v13_v12  }
  0x78   :  { %119 = vst.msk [vmem:[%s294_s1 + $0x1] ss:$8 sm:$0xf0] %vm3_vm0, %v13_v12  }
  0x79   :  { %141 = vst.msk [vmem:[%s294_s1 + $0x46] ss:$8 sm:$0xf] %vm3_vm0, %v97_v13  }
  0x7c   :  { %v37_v15 = vpop.permute.xlu1 %36   ;;  %v22_v16 = vpop.permute.xlu0 %21  }
  0x7d   :  { %125 = vst.msk [vmem:[%s294_s1 + $0x42] ss:$8 sm:$0xf] %vm3_vm0, %v37_v15  }
  0x7e   :  { %121 = vst.msk [vmem:[%s294_s1 + $0x41] ss:$8 sm:$0xf] %vm3_vm0, %v22_v16  }
  0x84   :  { %v67_v17 = vpop.permute.xlu1 %66   ;;  %v58_v18 = vpop.permute.xlu0 %57  }
  0x85   :  { %133 = vst.msk [vmem:[%s294_s1 + $0x44] ss:$8 sm:$0xf] %vm3_vm0, %v67_v17  }
  0x86   :  { %130 = vst.msk [vmem:[%s294_s1 + $0x4] ss:$8 sm:$0xf] %vm3_vm0, %v58_v18  }
  0x87   :  { %131 = vst.msk [vmem:[%s294_s1 + $0x4] ss:$8 sm:$0xf0] %vm3_vm0, %v58_v18  }
  0x8c   :  { %v88_v19 = vpop.permute.xlu1 %87   ;;  %v82_v20 = vpop.permute.xlu0 %81  }
  0x8d   :  { %138 = vst.msk [vmem:[%s294_s1 + $0x6] ss:$8 sm:$0xf] %vm3_vm0, %v88_v19  }
  0x8e   :  { %139 = vst.msk [vmem:[%s294_s1 + $0x6] ss:$8 sm:$0xf0] %vm3_vm0, %v88_v19  }
  0x8f   :  { %137 = vst.msk [vmem:[%s294_s1 + $0x45] ss:$8 sm:$0xf] %vm3_vm0, %v82_v20  }
  0x94   :  { %v112_v21 = vpop.permute.xlu1 %111   ;;  %v103_v22 = vpop.permute.xlu0 %102  }
  0x95   :  { %145 = vst.msk [vmem:[%s294_s1 + $0x47] ss:$8 sm:$0xf] %vm3_vm0, %v112_v21  }
  0x96   :  { %142 = vst.msk [vmem:[%s294_s1 + $0x7] ss:$8 sm:$0xf] %vm3_vm0, %v103_v22  }
  0x97   :  { %143 = vst.msk [vmem:[%s294_s1 + $0x7] ss:$8 sm:$0xf0] %vm3_vm0, %v103_v22  }

</bundles_post_ra>
